<compile_context>
chip_gen: v7x
topology: tpu7x:2x2x1
jax: 0.10.0
libtpu: 0.0.40
codegen_flags: <defaults>
</compile_context>

<pallas_src>
import jax
import jax.numpy as jnp
import numpy as np
from jax.experimental import pallas as pl
from jax.experimental.pallas import tpu as pltpu


def _rep3x3_kernel(x_ref, w_ref, b_ref, o_ref):
    """Fused RepVGG block = single 3x3 conv, one (N, H-tile) grid step.

    x_ref : (1, H+2, W+2, C)      zero-padded NHWC image (resident across t)
    w_ref : (9, C, Opad)          fused 3x3 weight, tap index = kh*3 + kw
    b_ref : (1, Opad)             fused bias (b3 + b1), lane-padded
    o_ref : (1, tile_h, W, Opad)  output tile, lane-dense (Opad % 128 == 0)
    """
    tile_h = o_ref.shape[1]
    w_out = o_ref.shape[2]
    opad = o_ref.shape[3]
    c_in = x_ref.shape[3]
    rows = tile_h * w_out

    t = pl.program_id(1)
    h0 = pl.multiple_of(t * tile_h, tile_h)

    # Halo'd input window for this H-tile (dynamic row offset, static extent).
    xt = x_ref[0, pl.ds(h0, tile_h + 2), :, :]          # (tile_h+2, W+2, C)
    w_all = w_ref[...]                                   # (9, C, Opad)

    # Bias baked into the accumulator init (one broadcast per tile).
    acc = jnp.broadcast_to(b_ref[...].astype(jnp.float32), (rows, opad))

    # 9 shifted MXU matmuls == 3x3 conv (im2col never materialised in HBM).
    for kh in range(3):
        for kw in range(3):
            patch = xt[kh:kh + tile_h, kw:kw + w_out, :].reshape(rows, c_in)
            acc = acc + jnp.dot(patch, w_all[kh * 3 + kw],
                                preferred_element_type=jnp.float32)

    o_ref[0] = acc.reshape(tile_h, w_out, opad).astype(o_ref.dtype)


def _pick_tile_h(H, W, opad, bytes_per_elem=4, budget_bytes=6 << 20):
    """Largest divisor of H whose double-buffered output block fits budget."""
    for d in range(H, 0, -1):
        if H % d == 0 and 2 * d * W * opad * bytes_per_elem <= budget_bytes:
            return d
    return 1


def rep_module_forward(x_nchw, w3, b3, w1, b1, *, tile_h=None,
                       compute_dtype=None):
    """RepVGG-style RepModule forward: conv3x3 + conv1x1 + identity (+biases).

    x_nchw: (N, C, H, W) float32        w3: (O, C, 3, 3)   b3: (O,)
    w1    : (O, C, 1, 1)                b1: (O,)
    returns (N, O, H, W)
    """
    N, C, H, W = x_nchw.shape
    O = w3.shape[0]
    assert O == C, "identity branch requires out_channels == in_channels"

    # ---- convert()-style branch fusion (wrapper side, one-time) -----------
    # centre tap <- w3 + w1 + I ; bias <- b3 + b1.  Mathematically identical
    # to summing the three branches, so the kernel needs a single matmul.
    w_fused = w3.at[:, :, 1, 1].add(w1[:, :, 0, 0] + jnp.eye(C, dtype=w3.dtype))
    bias = b3 + b1

    # Lane-dense output channels: pad O up to a multiple of 128 so the matmul
    # N-dim and the output stores are full-lane (unmasked vst).  No-op when O
    # is already 128-aligned; for small O it trades a few padded bytes for
    # dense stores/MXU columns.
    opad = ((O + 127) // 128) * 128

    # (O, C, 3, 3) -> (kh, kw, C, O) -> (9, C, O) -> lane-pad O.
    w_k = jnp.transpose(w_fused, (2, 3, 1, 0)).reshape(9, C, O)
    w_k = jnp.pad(w_k, ((0, 0), (0, 0), (0, opad - O)))
    b_k = jnp.pad(bias, (0, opad - O)).reshape(1, opad)

    # NCHW -> NHWC + zero-pad spatial by 1 (layout glue for the PyTorch API).
    x_nhwc = jnp.transpose(x_nchw, (0, 2, 3, 1))
    x_pad = jnp.pad(x_nhwc, ((0, 0), (1, 1), (1, 1), (0, 0)))

    cdt = compute_dtype if compute_dtype is not None else x_nchw.dtype
    x_pad = x_pad.astype(cdt)          # bf16 here doubles v5e/v6e MXU rate
    w_k = w_k.astype(cdt)              # (accumulation stays f32 in-kernel)

    if tile_h is None:
        tile_h = _pick_tile_h(H, W, opad)
    assert H % tile_h == 0, "tile_h must divide H"
    n_t = H // tile_h

    out = pl.pallas_call(
        _rep3x3_kernel,
        out_shape=jax.ShapeDtypeStruct((N, H, W, opad), x_nchw.dtype),
        grid=(N, n_t),
        in_specs=[
            # whole padded image per batch element; constant in t so it is
            # DMA'd once per n and stays resident across the H-tiles.
            pl.BlockSpec((1, H + 2, W + 2, C), lambda n, t: (n, 0, 0, 0)),
            pl.BlockSpec((9, C, opad), lambda n, t: (0, 0, 0)),
            pl.BlockSpec((1, opad), lambda n, t: (0, 0)),
        ],
        out_specs=pl.BlockSpec((1, tile_h, W, opad),
                               lambda n, t: (n, t, 0, 0)),
        compiler_params=pltpu.CompilerParams(
            dimension_semantics=("parallel", "parallel")),
    )(x_pad, w_k, b_k)

    y_nhwc = out[..., :O]                              # drop lane padding
    return jnp.transpose(y_nhwc, (0, 3, 1, 2))         # back to NCHW


def _reference_forward(x_nchw, w3, b3, w1, b1):
    """Pure-JAX reference (NCHW convs) for correctness checking."""
    dn = jax.lax.conv_dimension_numbers(x_nchw.shape, w3.shape,
                                        ("NCHW", "OIHW", "NCHW"))
    y3 = jax.lax.conv_general_dilated(x_nchw, w3, (1, 1),
                                      [(1, 1), (1, 1)], dimension_numbers=dn)
    y1 = jax.lax.conv_general_dilated(x_nchw, w1, (1, 1),
                                      [(0, 0), (0, 0)], dimension_numbers=dn)
    return (y3 + b3[None, :, None, None]
            + y1 + b1[None, :, None, None]
            + x_nchw)


if __name__ == "__main__":
    key = jax.random.PRNGKey(0)
    k_x, k_w3, k_b3, k_w1, k_b1 = jax.random.split(key, 5)

    N, C, H, W = 2, 4, 16, 16
    O = C  # identity branch condition

    x = jax.random.normal(k_x, (N, C, H, W), dtype=jnp.float32)
    w3 = jax.random.normal(k_w3, (O, C, 3, 3), dtype=jnp.float32) * 0.1
    b3 = jax.random.normal(k_b3, (O,), dtype=jnp.float32) * 0.1
    w1 = jax.random.normal(k_w1, (O, C, 1, 1), dtype=jnp.float32) * 0.1
    b1 = jax.random.normal(k_b1, (O,), dtype=jnp.float32) * 0.1

    # tile_h=8 -> grid (N=2, H/tile_h=2): exercises the multi-tile path.
    y = jax.block_until_ready(rep_module_forward(x, w3, b3, w1, b1, tile_h=8))
    y_ref = jax.block_until_ready(_reference_forward(x, w3, b3, w1, b1))

    np.testing.assert_allclose(np.asarray(y), np.asarray(y_ref),
                               rtol=1e-5, atol=1e-5)
    print("KERNEL_OK")
</pallas_src>

<mosaic_0001>
module attributes {stable_mosaic.version = 11 : i64} {
  func.func @_rep3x3_kernel(%arg0: i32, %arg1: i32, %arg2: memref<1x18x18x4xf32, #tpu.memory_space<vmem>>, %arg3: memref<9x4x128xf32, #tpu.memory_space<vmem>>, %arg4: memref<1x128xf32, #tpu.memory_space<vmem>>, %arg5: memref<1x8x16x128xf32, #tpu.memory_space<vmem>>) attributes {dimension_semantics = [#tpu.dimension_semantics<parallel>, #tpu.dimension_semantics<parallel>], iteration_bounds = array<i64: 2, 2>, scalar_prefetch = 0 : i64, scratch_operands = 0 : i64, tpu.core_type = #tpu.core_type<tc>, window_params = [{transform_indices = @transform_0, window_bounds = array<i64: 1, 18, 18, 4>}, {pipeline_mode = #tpu.pipeline_mode<synchronous>, transform_indices = @transform_1, window_bounds = array<i64: 9, 4, 128>}, {pipeline_mode = #tpu.pipeline_mode<synchronous>, transform_indices = @transform_2, window_bounds = array<i64: 1, 128>}, {transform_indices = @transform_3, window_bounds = array<i64: 1, 8, 16, 128>}]} {
    %c8_i32 = arith.constant 8 : i32
    %0 = arith.muli %arg1, %c8_i32 : i32
    %1 = tpu.assume_multiple %0, 8 : i32
    %c0 = arith.constant 0 : index
    %2 = arith.index_cast %1 : i32 to index
    %c0_0 = arith.constant 0 : index
    %c0_1 = arith.constant 0 : index
    %3 = vector.load %arg2[%c0, %2, %c0_0, %c0_1] : memref<1x18x18x4xf32, #tpu.memory_space<vmem>>, vector<1x10x18x4xf32>
    %4 = vector.shape_cast %3 : vector<1x10x18x4xf32> to vector<10x18x4xf32>
    %c0_2 = arith.constant 0 : index
    %c0_3 = arith.constant 0 : index
    %c0_4 = arith.constant 0 : index
    %5 = vector.load %arg3[%c0_2, %c0_3, %c0_4] : memref<9x4x128xf32, #tpu.memory_space<vmem>>, vector<9x4x128xf32>
    %c0_5 = arith.constant 0 : index
    %c0_6 = arith.constant 0 : index
    %6 = vector.load %arg4[%c0_5, %c0_6] : memref<1x128xf32, #tpu.memory_space<vmem>>, vector<1x128xf32>
    %7 = vector.shape_cast %6 : vector<1x128xf32> to vector<1x128xf32>
    %8 = vector.broadcast %7 : vector<1x128xf32> to vector<128x128xf32>
    %9 = vector.extract_strided_slice %4 {offsets = [0, 0, 0], sizes = [8, 16, 4], strides = [1, 1, 1]} : vector<10x18x4xf32> to vector<8x16x4xf32>
    %10 = vector.shape_cast %9 : vector<8x16x4xf32> to vector<128x4xf32>
    %11 = vector.extract_strided_slice %5 {offsets = [0, 0, 0], sizes = [1, 4, 128], strides = [1, 1, 1]} : vector<9x4x128xf32> to vector<1x4x128xf32>
    %12 = vector.shape_cast %11 : vector<1x4x128xf32> to vector<4x128xf32>
    %cst = arith.constant dense<0.000000e+00> : vector<128x128xf32>
    %13 = tpu.matmul %10, %12, %cst {dimension_numbers = #tpu.dot_dimension_numbers<[1], [0], [0], [1], [0, 0, 1, 1], [], []>} : vector<128x4xf32>, vector<4x128xf32>, vector<128x128xf32> -> vector<128x128xf32>
    %14 = arith.addf %8, %13 : vector<128x128xf32>
    %15 = vector.extract_strided_slice %4 {offsets = [0, 1, 0], sizes = [8, 16, 4], strides = [1, 1, 1]} : vector<10x18x4xf32> to vector<8x16x4xf32>
    %16 = vector.shape_cast %15 : vector<8x16x4xf32> to vector<128x4xf32>
    %17 = vector.extract_strided_slice %5 {offsets = [1, 0, 0], sizes = [1, 4, 128], strides = [1, 1, 1]} : vector<9x4x128xf32> to vector<1x4x128xf32>
    %18 = vector.shape_cast %17 : vector<1x4x128xf32> to vector<4x128xf32>
    %cst_7 = arith.constant dense<0.000000e+00> : vector<128x128xf32>
    %19 = tpu.matmul %16, %18, %cst_7 {dimension_numbers = #tpu.dot_dimension_numbers<[1], [0], [0], [1], [0, 0, 1, 1], [], []>} : vector<128x4xf32>, vector<4x128xf32>, vector<128x128xf32> -> vector<128x128xf32>
    %20 = arith.addf %14, %19 : vector<128x128xf32>
    %21 = vector.extract_strided_slice %4 {offsets = [0, 2, 0], sizes = [8, 16, 4], strides = [1, 1, 1]} : vector<10x18x4xf32> to vector<8x16x4xf32>
    %22 = vector.shape_cast %21 : vector<8x16x4xf32> to vector<128x4xf32>
    %23 = vector.extract_strided_slice %5 {offsets = [2, 0, 0], sizes = [1, 4, 128], strides = [1, 1, 1]} : vector<9x4x128xf32> to vector<1x4x128xf32>
    %24 = vector.shape_cast %23 : vector<1x4x128xf32> to vector<4x128xf32>
    %cst_8 = arith.constant dense<0.000000e+00> : vector<128x128xf32>
    %25 = tpu.matmul %22, %24, %cst_8 {dimension_numbers = #tpu.dot_dimension_numbers<[1], [0], [0], [1], [0, 0, 1, 1], [], []>} : vector<128x4xf32>, vector<4x128xf32>, vector<128x128xf32> -> vector<128x128xf32>
    %26 = arith.addf %20, %25 : vector<128x128xf32>
    %27 = vector.extract_strided_slice %4 {offsets = [1, 0, 0], sizes = [8, 16, 4], strides = [1, 1, 1]} : vector<10x18x4xf32> to vector<8x16x4xf32>
    %28 = vector.shape_cast %27 : vector<8x16x4xf32> to vector<128x4xf32>
    %29 = vector.extract_strided_slice %5 {offsets = [3, 0, 0], sizes = [1, 4, 128], strides = [1, 1, 1]} : vector<9x4x128xf32> to vector<1x4x128xf32>
    %30 = vector.shape_cast %29 : vector<1x4x128xf32> to vector<4x128xf32>
    %cst_9 = arith.constant dense<0.000000e+00> : vector<128x128xf32>
    %31 = tpu.matmul %28, %30, %cst_9 {dimension_numbers = #tpu.dot_dimension_numbers<[1], [0], [0], [1], [0, 0, 1, 1], [], []>} : vector<128x4xf32>, vector<4x128xf32>, vector<128x128xf32> -> vector<128x128xf32>
    %32 = arith.addf %26, %31 : vector<128x128xf32>
    %33 = vector.extract_strided_slice %4 {offsets = [1, 1, 0], sizes = [8, 16, 4], strides = [1, 1, 1]} : vector<10x18x4xf32> to vector<8x16x4xf32>
    %34 = vector.shape_cast %33 : vector<8x16x4xf32> to vector<128x4xf32>
    %35 = vector.extract_strided_slice %5 {offsets = [4, 0, 0], sizes = [1, 4, 128], strides = [1, 1, 1]} : vector<9x4x128xf32> to vector<1x4x128xf32>
    %36 = vector.shape_cast %35 : vector<1x4x128xf32> to vector<4x128xf32>
    %cst_10 = arith.constant dense<0.000000e+00> : vector<128x128xf32>
    %37 = tpu.matmul %34, %36, %cst_10 {dimension_numbers = #tpu.dot_dimension_numbers<[1], [0], [0], [1], [0, 0, 1, 1], [], []>} : vector<128x4xf32>, vector<4x128xf32>, vector<128x128xf32> -> vector<128x128xf32>
    %38 = arith.addf %32, %37 : vector<128x128xf32>
    %39 = vector.extract_strided_slice %4 {offsets = [1, 2, 0], sizes = [8, 16, 4], strides = [1, 1, 1]} : vector<10x18x4xf32> to vector<8x16x4xf32>
    %40 = vector.shape_cast %39 : vector<8x16x4xf32> to vector<128x4xf32>
    %41 = vector.extract_strided_slice %5 {offsets = [5, 0, 0], sizes = [1, 4, 128], strides = [1, 1, 1]} : vector<9x4x128xf32> to vector<1x4x128xf32>
    %42 = vector.shape_cast %41 : vector<1x4x128xf32> to vector<4x128xf32>
    %cst_11 = arith.constant dense<0.000000e+00> : vector<128x128xf32>
    %43 = tpu.matmul %40, %42, %cst_11 {dimension_numbers = #tpu.dot_dimension_numbers<[1], [0], [0], [1], [0, 0, 1, 1], [], []>} : vector<128x4xf32>, vector<4x128xf32>, vector<128x128xf32> -> vector<128x128xf32>
    %44 = arith.addf %38, %43 : vector<128x128xf32>
    %45 = vector.extract_strided_slice %4 {offsets = [2, 0, 0], sizes = [8, 16, 4], strides = [1, 1, 1]} : vector<10x18x4xf32> to vector<8x16x4xf32>
    %46 = vector.shape_cast %45 : vector<8x16x4xf32> to vector<128x4xf32>
    %47 = vector.extract_strided_slice %5 {offsets = [6, 0, 0], sizes = [1, 4, 128], strides = [1, 1, 1]} : vector<9x4x128xf32> to vector<1x4x128xf32>
    %48 = vector.shape_cast %47 : vector<1x4x128xf32> to vector<4x128xf32>
    %cst_12 = arith.constant dense<0.000000e+00> : vector<128x128xf32>
    %49 = tpu.matmul %46, %48, %cst_12 {dimension_numbers = #tpu.dot_dimension_numbers<[1], [0], [0], [1], [0, 0, 1, 1], [], []>} : vector<128x4xf32>, vector<4x128xf32>, vector<128x128xf32> -> vector<128x128xf32>
    %50 = arith.addf %44, %49 : vector<128x128xf32>
    %51 = vector.extract_strided_slice %4 {offsets = [2, 1, 0], sizes = [8, 16, 4], strides = [1, 1, 1]} : vector<10x18x4xf32> to vector<8x16x4xf32>
    %52 = vector.shape_cast %51 : vector<8x16x4xf32> to vector<128x4xf32>
    %53 = vector.extract_strided_slice %5 {offsets = [7, 0, 0], sizes = [1, 4, 128], strides = [1, 1, 1]} : vector<9x4x128xf32> to vector<1x4x128xf32>
    %54 = vector.shape_cast %53 : vector<1x4x128xf32> to vector<4x128xf32>
    %cst_13 = arith.constant dense<0.000000e+00> : vector<128x128xf32>
    %55 = tpu.matmul %52, %54, %cst_13 {dimension_numbers = #tpu.dot_dimension_numbers<[1], [0], [0], [1], [0, 0, 1, 1], [], []>} : vector<128x4xf32>, vector<4x128xf32>, vector<128x128xf32> -> vector<128x128xf32>
    %56 = arith.addf %50, %55 : vector<128x128xf32>
    %57 = vector.extract_strided_slice %4 {offsets = [2, 2, 0], sizes = [8, 16, 4], strides = [1, 1, 1]} : vector<10x18x4xf32> to vector<8x16x4xf32>
    %58 = vector.shape_cast %57 : vector<8x16x4xf32> to vector<128x4xf32>
    %59 = vector.extract_strided_slice %5 {offsets = [8, 0, 0], sizes = [1, 4, 128], strides = [1, 1, 1]} : vector<9x4x128xf32> to vector<1x4x128xf32>
    %60 = vector.shape_cast %59 : vector<1x4x128xf32> to vector<4x128xf32>
    %cst_14 = arith.constant dense<0.000000e+00> : vector<128x128xf32>
    %61 = tpu.matmul %58, %60, %cst_14 {dimension_numbers = #tpu.dot_dimension_numbers<[1], [0], [0], [1], [0, 0, 1, 1], [], []>} : vector<128x4xf32>, vector<4x128xf32>, vector<128x128xf32> -> vector<128x128xf32>
    %62 = arith.addf %56, %61 : vector<128x128xf32>
    %63 = vector.shape_cast %62 : vector<128x128xf32> to vector<8x16x128xf32>
    %c0_15 = arith.constant 0 : index
    %c0_16 = arith.constant 0 : index
    %c0_17 = arith.constant 0 : index
    %c0_18 = arith.constant 0 : index
    %64 = vector.load %arg5[%c0_15, %c0_16, %c0_17, %c0_18] : memref<1x8x16x128xf32, #tpu.memory_space<vmem>>, vector<1x8x16x128xf32>
    %65 = vector.shape_cast %64 : vector<1x8x16x128xf32> to vector<8x16x128xf32>
    %66 = vector.shape_cast %63 : vector<8x16x128xf32> to vector<1x8x16x128xf32>
    tpu.vector_store %arg5[%c0_15, %c0_16, %c0_17, %c0_18], %66 {strides = array<i32>} : memref<1x8x16x128xf32, #tpu.memory_space<vmem>>, vector<1x8x16x128xf32>,
    return
  }
  func.func @transform_0(%arg0: i32, %arg1: i32) -> (i32, i32, i32, i32) {
    %c0_i32 = arith.constant 0 : i32
    %c0_i32_0 = arith.constant 0 : i32
    %c0_i32_1 = arith.constant 0 : i32
    %c0_i32_2 = arith.constant 0 : i32
    return %arg0, %c0_i32, %c0_i32_0, %c0_i32_1 : i32, i32, i32, i32
  }
  func.func @transform_1(%arg0: i32, %arg1: i32) -> (i32, i32, i32) {
    %c0_i32 = arith.constant 0 : i32
    %c0_i32_0 = arith.constant 0 : i32
    %c0_i32_1 = arith.constant 0 : i32
    %c0_i32_2 = arith.constant 0 : i32
    return %c0_i32, %c0_i32_0, %c0_i32_1 : i32, i32, i32
  }
  func.func @transform_2(%arg0: i32, %arg1: i32) -> (i32, i32) {
    %c0_i32 = arith.constant 0 : i32
    %c0_i32_0 = arith.constant 0 : i32
    %c0_i32_1 = arith.constant 0 : i32
    return %c0_i32, %c0_i32_0 : i32, i32
  }
  func.func @transform_3(%arg0: i32, %arg1: i32) -> (i32, i32, i32, i32) {
    %c0_i32 = arith.constant 0 : i32
    %c0_i32_0 = arith.constant 0 : i32
    %c0_i32_1 = arith.constant 0 : i32
    return %arg0, %arg1, %c0_i32, %c0_i32_0 : i32, i32, i32, i32
  }
}

</mosaic_0001>

<bundles_post_ra>
// kernel: tpu_custom_call.1
= control target key start
LH: loop header
LB: loop body
LE: loop exit
PB: predicated region body
PF: predicated region fallthrough
CT: control target
= control target key end

     0   :  { %8 = vsyncpa [#allocation3], 0  ;;  %s3739_s0 = inlined_call_operand.vmem [shape: f32[2,18,18,4], index: 0, kind: input, shape index: {}]   ;;  %s3740_s1 = inlined_call_operand.vmem [shape: f32[9,4,128], index: 1, kind: input, shape index: {}]   ;;  %s3741_s2 = inlined_call_operand.vmem [shape: f32[1,128], index: 2, kind: input, shape index: {}]   ;;  %s3742_s3 = inlined_call_operand.hbm [shape: f32[2,16,16,128], index: 3, kind: output, shape index: {}]  }
   0x1   :  { %10 = vsyncpa [#allocation3 + $0x1], 0  ;;  %s2971_s12 = smov 0   ;;  %s2973_s13 = smov 0  }
   0x2   :  { %s2975_s14 = smov 0   ;;  %s2977_s15 = smov 0  }
   0x3   :  { %s2979_s16 = smov 0   ;;  %s2981_s17 = smov 0  }
   0x4   :  { %s2983_s18 = smov 0   ;;  %s2985_s19 = smov 0  }
   0x5 LB: > { %s2074_s20 = sadd.s32 4294967295, %s2946_s19   ;;  %s2075_s21 = sadd.s32 4294967294, %s2946_s19   ;;  %s2946_s19 = sphi %s2985_s19, %s16_s19   ;;  %s2942_s18 = sphi %s2983_s18, %s3753_s18   ;;  %s2938_s17 = sphi %s2981_s17, %s3752_s17   ;;  %s2934_s16 = sphi %s2979_s16, %s3751_s16   ;;  %s2930_s15 = sphi %s2977_s15, %s3750_s15   ;;  %s2926_s14 = sphi %s2975_s14, %s3749_s14   ;;  %s2922_s13 = sphi %s2973_s13, %s3748_s13   ;;  %s2918_s12 = sphi %s2971_s12, %s3747_s12  }
   0x6   : > { %s25_s22 = sadd.s32 1, %s2938_s17  ;;  %s28_s23 = sadd.s32 1, %s2942_s18 }
   0x7   : > { %p26_p0 = scmp.ge.s32.totalorder %s25_s22, 2  ;;  %p115_p1 = scmp.ne.s32.totalorder %s2926_s14, %s2922_s13 }
   0x8   : > { %p116_p2 = scmp.eq.s32.totalorder %s2074_s20, 3  ;;  %p121_p5 = scmp.ne.s32.totalorder %s2922_s13, %s2918_s12 }
   0x9   : > { %s3755_s22 = smov (%p26_p0, %s25_s22), 0  ;;  %s3757_s23 = smov (!%p26_p0, %s28_s23), %s2942_s18 }
   0xa   : > { %s101_s24 = ssub.s32 %s2938_s17, %s3755_s22  ;;  %p3022_p3 = por %p116_p2, %p115_p1 }
   0xb   : > { %p30_p4 = scmp.ge.s32.totalorder %s3757_s23, 2  ;;  %p122_p6 = scmp.eq.s32.totalorder %s2075_s21, 3 }
   0xc   : > { %p2078_p7 = scmp.ge.s32.totalorder %s2946_s19, 1  ;;  %p154_p9 = scmp.lt.s32.totalorder %s2946_s19, 5 }
   0xd   : > { %s3759_s23 = smov (%p30_p4, %s3757_s23), 0  ;;  %p3031_p8 = por %p122_p6, %p121_p5 }
   0xe   : > { %s100_s27 = ssub.s32 %s2942_s18, %s3759_s23  ;;  %s105_s28 = sadd.s32 1, %s2926_s14 }
   0xf   : > { %s102_s29 = sor.u32 %s101_s24, %s100_s27  ;;  %p155_p10 = pnand %p2078_p7, %p154_p9 }
  0x10   : > { %p103_p11 = scmp.eq.s32.totalorder %s102_s29, 0 }
  0x11   : > { %158 = sbr.rel (%p155_p10) target bundleno = 408 (0x198), region = 32 }
  0x12   : > { %s3040_s30 = scalar_select %p103_p11, %s2926_s14, %s105_s28  }
  0x18   : > { %v217_v0 = vld [vmem:[%s3740_s1] sm:$0xf]  ;;  %vm282_vm0 = vcmask 1043456   ;;  %p178_p12 = scmp.lt.s32.totalorder %s2934_s16, 1  ;;  %v218_v1 = vld [vmem:[%s3740_s1 + $0x4] sm:$0xf] }
  0x19   : > { %2398 = vmatprep.subr.msk.mxu1 %vm282_vm0, %v217_v0  ;;  %v3053_v2 = vld [vmem:[%s3740_s1 + $0x10] sm:$0xf]  ;;  %v222_v3 = vld [vmem:[%s3740_s1 + $0x14] sm:$0xf]  ;;  %s2082_s21 = smul.u32 192, %s2930_s15  ;;  %vm233_vm1 = vcmask 31744  }
  0x1a   : > { %2399 = vmatpush3.msk.msra.mxu1 %vm282_vm0, %v217_v0  ;;  %s179_s10 = scalar_select %p178_p12, %s2934_s16, 1  ;;  %2502 = vmatprep.subr.msk.mxu0 %vm282_vm0, %v3053_v2  ;;  %vm455_vm2 = vcmask 1046528   ;;  %v3092_v9 = vld [vmem:[%s3740_s1 + $0x8] sm:$0xf]  ;;  %v223_v29 = vld [vmem:[%s3740_s1 + $0x18] sm:$0xf] }
  0x1b   : > { %2424 = vmatprep.subr.msk.mxu1 %vm282_vm0, %v218_v1  ;;  %2503 = vmatpush3.msk.msra.mxu0 %vm282_vm0, %v3053_v2  ;;  %vm692_vm3 = vcmask 1045504   ;;  %v3225_v53 = vld [vmem:[%s3740_s1 + $0x1c] sm:$0xf]  ;;  %s175_s27 = sand.u32 1, %s2922_s13   ;;  %s2244_s6 = sshll.u32 %s2930_s15, 4 }
  0x1c   : > { %s2778_s24 = smul.u32 432, %s179_s10  ;;  %2528 = vmatprep.subr.msk.mxu0 %vm282_vm0, %v222_v3  ;;  %s2240_s7 = sshll.u32 %s2934_s16, 5 }
  0x1d   : > { %s1993_s8 = sadd.s32 %s2244_s6, %s2240_s7  ;;  %s3687_s20 = scalar_lea.sflag [#allocation3], %s175_s27 }
  0x1e   : > { %s182_s29 = scalar_lea.vmem %s3739_s0, %s2778_s24  ;;  %s2241_s15 = sshll.u32 %s1993_s8, 7 }
  0x1f   : > { %s3070_s4 = scalar_lea.vmem %s182_s29, %s2082_s21  ;;  %s3679_s11 = scalar_lea.hbm %s3742_s3, %s2241_s15 }
  0x20   : > { %v3073_v4 = vld [vmem:[%s3070_s4] sm:$0xff]  ;;  %v3076_v5 = vld [vmem:[%s3070_s4 + $0x8] sm:$0xff]  ;;  %v3079_v6 = vld [vmem:[%s3070_s4 + $0x18] sm:$0xff]  ;;  %s2948_s24 = smov [#allocation2]  }
  0x21   : > { %2400 = vmatprep.mubr.msk.f32.mxu1 %vm233_vm1, %v3073_v4  ;;  %v3084_v7 = vld [vmem:[%s3070_s4 + $0x20] sm:$0xff]  ;;  %v3087_v8 = vld [vmem:[%s3070_s4 + $0x30] sm:$0xff]  ;;  %v461_v10 = vrot.slane %v3079_v6, 1  ;;  %v192_v12 = vld [vmem:[%s3070_s4 + $0x28] sm:$0x3]  ;;  %v698_v39 = vrot.slane %v3079_v6, 2 }
  0x22   : > { %2401 = vmatmul.mubr.msk.f32.vlgmr.msra.gmra.mrb[0].mxu1 %vm233_vm1, %v3076_v5  ;;  %v462_v11 = vrot.slane %v3084_v7, 1  ;;  %v3100_v13 = vld [vmem:[%s3070_s4 + $0x38] sm:$0xff]  ;;  %v466_v14 = vrot.slane %v3087_v8, 1  ;;  %v464_v15 = vrot.slane %v192_v12, 1  ;;  %v3108_v17 = vld [vmem:[%s3070_s4 + $0x40] sm:$0x3] }
  0x23   : > { %2425 = vmatpush3.msk.msra.mxu1 %vm282_vm0, %v218_v1  ;;  %2403 = vmatprep.mubr.msk.f32.mxu1 %vm233_vm1, %v3079_v6  ;;  %v467_v16 = vrot.slane %v3100_v13, 1  ;;  %v3111_v18 = vld [vmem:[%s3070_s4 + $0x48] sm:$0xff]  ;;  %v469_v20 = vrot.slane %v3108_v17, 1  ;;  %v3118_v21 = vld [vmem:[%s3070_s4 + $0x50] sm:$0xff]  ;;  %v3122_v23 = vld [vmem:[%s3070_s4 + $0x58] sm:$0x3] }
  0x24   : > { %v3114_v19 = vsel %vm455_vm2, %v461_v10, %v462_v11  ;;  %v471_v22 = vrot.slane %v3111_v18, 1  ;;  %2450 = vmatprep.subr.msk.mxu1 %vm282_vm0, %v3092_v9  ;;  %v3129_v24 = vsel %vm455_vm2, %v462_v11, %v464_v15  ;;  %v472_v26 = vrot.slane %v3118_v21, 1  ;;  %v3136_v27 = vld [vmem:[%s3070_s4 + $0x60] sm:$0xff]  ;;  %v3139_v28 = vld [vmem:[%s3070_s4 + $0x68] sm:$0xff]  ;;  %v3163_v35 = vld [vmem:[%s3070_s4 + $0x70] sm:$0x3] }
  0x25   : > { %2504 = vmatprep.mubr.msk.f32.mxu0 %vm233_vm1, %v3114_v19  ;;  %v3132_v25 = vsel %vm455_vm2, %v466_v14, %v467_v16  ;;  %v3152_v30 = vsel %vm455_vm2, %v467_v16, %v469_v20  ;;  %v474_v31 = vrot.slane %v3122_v23, 1  ;;  %v476_v33 = vrot.slane %v3136_v27, 1  ;;  %v3198_v44 = vld [vmem:[%s3070_s4 + $0x78] sm:$0xff]  ;;  %v3214_v48 = vld [vmem:[%s3070_s4 + $0x80] sm:$0xff]  ;;  %v3232_v56 = vld [vmem:[%s3070_s4 + $0x90] sm:$0xff]  ;;  %s2856_s28 = sshll.u32 %s2948_s24, 4  ;;  %s2857_s28 = int_to_ptr.vmem [resolvable:$false] %s2856_s28 }
  0x26   : > { %2505 = vmatmul.mubr.msk.f32.vlgmr.msra.gmra.mrb[0].mxu0 %vm233_vm1, %v3129_v24  ;;  %2404 = vmatmul.mubr.msk.f32.gmra.mrb[2].mxu1 %vm233_vm1, %v3084_v7  ;;  %v3158_v32 = vsel %vm455_vm2, %v471_v22, %v472_v26  ;;  %v477_v34 = vrot.slane %v3139_v28, 1  ;;  %v479_v37 = vrot.slane %v3163_v35, 1  ;;  %v699_v40 = vrot.slane %v3084_v7, 2  ;;  %v3228_v54 = vld [vmem:[%s3070_s4 + $0xd8] sm:$0xff]  ;;  %v3236_v58 = vld [vmem:[%s3070_s4 + $0xe0] sm:$0xff]  ;;  %v3265_v14 = vld [vmem:[%s3070_s4 + $0xa8] sm:$0xff] }
  0x27   : > { %2529 = vmatpush3.msk.msra.mxu0 %vm282_vm0, %v222_v3  ;;  %2507 = vmatprep.mubr.msk.f32.mxu0 %vm233_vm1, %v3132_v25  ;;  %v3175_v36 = vsel %vm455_vm2, %v472_v26, %v474_v31  ;;  %v701_v41 = vrot.slane %v192_v12, 2  ;;  %v703_v45 = vrot.slane %v3087_v8, 2  ;;  %v704_v46 = vrot.slane %v3100_v13, 2  ;;  %v216_v59 = vld [vmem:[%s3070_s4 + $0xe8] sm:$0x3]  ;;  %v3254_v1 = vld [vmem:[%s3070_s4 + $0x98] sm:$0xff] }
  0x28   : > { %2406 = vmatprep.mubr.msk.f32.mxu1 %vm233_vm1, %v3087_v8  ;;  %2554 = vmatprep.subr.msk.mxu0 %vm282_vm0, %v223_v29  ;;  %v3179_v38 = vsel %vm455_vm2, %v476_v33, %v477_v34  ;;  %v3192_v42 = vsel %vm455_vm2, %v477_v34, %v479_v37  ;;  %v3195_v43 = vsel %vm692_vm3, %v698_v39, %v699_v40  ;;  %v706_v49 = vrot.slane %v3108_v17, 2  ;;  %v3268_v15 = vld [vmem:[%s3070_s4 + $0x10] sm:$0x3]  ;;  %s2858_s29 = scalar_lea.vmem %s2857_s28, 4096 }
  0x29   : > { %v3211_v47 = vsel %vm692_vm3, %v699_v40, %v701_v41  ;;  %v3218_v50 = vsel %vm692_vm3, %v703_v45, %v704_v46  ;;  %v708_v51 = vrot.slane %v3111_v18, 2  ;;  %v709_v52 = vrot.slane %v3118_v21, 2  ;;  %v3296_v31 = vld [vmem:[%s3070_s4 + $0xb0] sm:$0xff]  ;;  %v204_v45 = vld [vmem:[%s3070_s4 + $0x88] sm:$0x3] }
  0x2a   : > { %2508 = vmatmul.mubr.msk.f32.gmra.mrb[2].mxu0 %vm233_vm1, %v3152_v30  ;;  %2407 = vmatmul.mubr.msk.f32.gmra.mrb[4].mxu1 %vm233_vm1, %v3100_v13  ;;  %v456_v55 = vrot.slane %v3073_v4, 1  ;;  %v1617_v57 = vrot.slane %v3228_v54, 1  ;;  %v457_v60 = vrot.slane %v3076_v5, 1  ;;  %v711_v61 = vrot.slane %v3122_v23, 2 }
  0x2b   : > { %2510 = vmatprep.mubr.msk.f32.mxu0 %vm233_vm1, %v3158_v32  ;;  %2409 = vmatprep.mubr.msk.f32.mxu1 %vm233_vm1, %v3111_v18  ;;  %v1790_v62 = vrot.slane %v3228_v54, 2  ;;  %v1618_v63 = vrot.slane %v3236_v58, 1  ;;  %v3251_v0 = vsel %vm692_vm3, %v704_v46, %v706_v49  ;;  %v713_v3 = vrot.slane %v3136_v27, 2 }
  0x2c   : > { %v714_v10 = vrot.slane %v3139_v28, 2  ;;  %v1791_v11 = vrot.slane %v3236_v58, 2  ;;  %v3262_v12 = vsel %vm692_vm3, %v708_v51, %v709_v52  ;;  %v1620_v17 = vrot.slane %v216_v59, 1 }
  0x2d   : > { %v3273_v16 = vsel %vm455_vm2, %v1617_v57, %v1618_v63  ;;  %v1793_v20 = vrot.slane %v216_v59, 2  ;;  %v716_v33 = vrot.slane %v3163_v35, 2  ;;  %v459_v34 = vrot.slane %v3268_v15, 1  ;;  %v207_v57 = vld [vmem:[%s3070_s4 + $0xa0] sm:$0x3] }
  0x2e   : > { %2511 = vmatmul.mubr.msk.f32.gmra.mrb[4].mxu0 %vm233_vm1, %v3175_v36  ;;  %2410 = vmatmul.mubr.msk.f32.gmra.mrb[6].mxu1 %vm233_vm1, %v3118_v21  ;;  %v3276_v22 = vsel %vm692_vm3, %v1790_v62, %v1791_v11  ;;  %v3283_v23 = vsel %vm455_vm2, %v1618_v63, %v1620_v17  ;;  %v3301_v37 = vsel %vm692_vm3, %v713_v3, %v714_v10  ;;  %v718_v40 = vrot.slane %v3198_v44, 2  ;;  %v3327_v59 = vld [vmem:[%s3740_s1 + $0xc] sm:$0xf] }
  0x2f   : > { %2513 = vmatprep.mubr.msk.f32.mxu0 %vm233_vm1, %v3179_v38  ;;  %2412 = vmatprep.mubr.msk.f32.mxu1 %vm233_vm1, %v3136_v27  ;;  %v3286_v26 = vsel %vm692_vm3, %v1791_v11, %v1793_v20  ;;  %v458_v39 = vsel %vm455_vm2, %v456_v55, %v457_v60  ;;  %v719_v41 = vrot.slane %v3214_v48, 2  ;;  %v3315_v35 = vsel %vm692_vm3, %v714_v10, %v716_v33  ;;  %v210_v10 = vld [vmem:[%s3070_s4 + $0xb8] sm:$0x3]  ;;  %v3353_v11 = vld [vmem:[%s3070_s4 + $0xc8] sm:$0xff] }
  0x30   : > { %3745 = vst [vmem:[#allocation5_spill] sm:$0xff] %v3286_v26  ;;  %v460_v46 = vsel %vm455_vm2, %v457_v60, %v459_v34  ;;  %v721_v49 = vrot.slane %v204_v45, 2  ;;  %v724_v55 = vrot.slane %v3254_v1, 2  ;;  %v728_v63 = vrot.slane %v3265_v14, 2 }
  0x31   : > { %v3319_v51 = vsel %vm692_vm3, %v718_v40, %v719_v41  ;;  %v729_v3 = vrot.slane %v3296_v31, 2  ;;  %v731_v17 = vrot.slane %v210_v10, 2  ;;  %v1274_v34 = vrot.slane %v3353_v11, 2 }
  0x32   : > { %2514 = vmatmul.mubr.msk.f32.gmra.mrb[6].mxu0 %vm233_vm1, %v3192_v42  ;;  %2413 = vmatmul.mubr.msk.f32.gmra.mrb[8].mxu1 %vm233_vm1, %v3139_v28  ;;  %v3337_v60 = vsel %vm692_vm3, %v719_v41, %v721_v49  ;;  %v482_v49 = vrot.slane %v3214_v48, 1 }
  0x33   : > { %2530 = vmatprep.mubr.msk.f32.mxu0 %vm233_vm1, %v3195_v43  ;;  %2415 = vmatprep.mubr.msk.f32.mxu1 %vm233_vm1, %v3198_v44  ;;  %v3367_v20 = vsel %vm692_vm3, %v728_v63, %v729_v3  ;;  %v486_v63 = vrot.slane %v3232_v56, 1 }
  0x36   : > { %2531 = vmatmul.mubr.msk.f32.vlgmr.msra.gmra.mrb[0].mxu0 %vm233_vm1, %v3211_v47  ;;  %2416 = vmatmul.mubr.msk.f32.gmra.mrb[10].mxu1 %vm233_vm1, %v3214_v48 }
  0x37   : > { %2555 = vmatpush3.msk.msra.mxu0 %vm282_vm0, %v223_v29  ;;  %2533 = vmatprep.mubr.msk.f32.mxu0 %vm233_vm1, %v3218_v50  ;;  %v3293_v29 = vsel %vm692_vm3, %v709_v52, %v711_v61  ;;  %v723_v52 = vrot.slane %v3232_v56, 2  ;;  %v726_v61 = vrot.slane %v207_v57, 2 }
  0x38   : > { %2418 = vmatprep.mubr.msk.f32.mxu1 %vm233_vm1, %v3232_v56  ;;  %2580 = vmatprep.subr.msk.mxu0 %vm282_vm0, %v3225_v53 }
  0x39   : > { %v3342_v62 = vsel %vm692_vm3, %v723_v52, %v724_v55 }
  0x3a   : > { %2534 = vmatmul.mubr.msk.f32.gmra.mrb[2].mxu0 %vm233_vm1, %v3251_v0  ;;  %2419 = vmatmul.mubr.msk.f32.gmra.mrb[12].mxu1 %vm233_vm1, %v3254_v1 }
  0x3b   : > { %2536 = vmatprep.mubr.msk.f32.mxu0 %vm233_vm1, %v3262_v12  ;;  %2421 = vmatprep.mubr.msk.f32.mxu1 %vm233_vm1, %v3265_v14 }
  0x3e   : > { %2537 = vmatmul.mubr.msk.f32.gmra.mrb[4].mxu0 %vm233_vm1, %v3293_v29  ;;  %2422 = vmatmul.mubr.msk.f32.gmra.mrb[14].mxu1 %vm233_vm1, %v3296_v31 }
  0x3f   : > { %2539 = vmatprep.mubr.msk.f32.mxu0 %vm233_vm1, %v3301_v37  ;;  %2426 = vmatprep.mubr.msk.f32.mxu1 %vm233_vm1, %v458_v39  ;;  %v3372_v39 = vld [vmem:[%s3070_s4 + $0xd0] sm:$0x3] }
  0x40   : > { %v1276_v40 = vrot.slane %v3372_v39, 2 }
  0x42   : > { %2540 = vmatmul.mubr.msk.f32.gmra.mrb[6].mxu0 %vm233_vm1, %v3315_v35  ;;  %2427 = vmatmul.mubr.msk.f32.vlgmr.msra.gmra.mrb[0].mxu1 %vm233_vm1, %v460_v46  ;;  %v481_v46 = vrot.slane %v3198_v44, 1  ;;  %v3400_v52 = vsel %vm692_vm3, %v1274_v34, %v1276_v40 }
  0x43   : > { %2451 = vmatpush3.msk.msra.mxu1 %vm282_vm0, %v3092_v9  ;;  %2542 = vmatprep.mubr.msk.f32.mxu0 %vm233_vm1, %v3319_v51  ;;  %v3350_v9 = vld [vmem:[%s3070_s4 + $0xc0] sm:$0xff]  ;;  %s2079_s4 = sshll.u32 %s175_s27, 7 }
  0x44   : > { %2429 = vmatprep.mubr.msk.f32.mxu1 %vm233_vm1, %v3114_v19  ;;  %2476 = vmatprep.subr.msk.mxu1 %vm282_vm0, %v3327_v59  ;;  %v3364_v19 = vsel %vm692_vm3, %v724_v55, %v726_v61  ;;  %v1273_v33 = vrot.slane %v3350_v9, 2  ;;  %v484_v55 = vrot.slane %v204_v45, 1  ;;  %v3403_v61 = vsel %vm455_vm2, %v481_v46, %v482_v49  ;;  %v225_v46 = vld [vmem:[%s3740_s1 + $0x20] sm:$0xf]  ;;  %s3644_s5 = scalar_lea.vmem [#allocation2], %s2079_s4 }
  0x45   : > { %s1996_s16 = sshll.u32 %s3644_s5, 4  ;;  %s3681_s16 = int_to_ptr.vmem [resolvable:$true] %s1996_s16 }
  0x46   : > { %2543 = vmatmul.mubr.msk.f32.gmra.mrb[8].mxu0 %vm233_vm1, %v3337_v60  ;;  %2430 = vmatmul.mubr.msk.f32.gmra.mrb[2].mxu1 %vm233_vm1, %v3129_v24  ;;  %v3383_v24 = vsel %vm692_vm3, %v729_v3, %v731_v17  ;;  %v3387_v41 = vsel %vm692_vm3, %v1273_v33, %v1274_v34  ;;  %v487_v3 = vrot.slane %v3254_v1, 1  ;;  %v3416_v45 = vsel %vm455_vm2, %v482_v49, %v484_v55  ;;  %s2852_s21 = scalar_lea.vmem %s3681_s16, 2048  ;;  %p2859_p2 = scmp.lt.s32.totalorder %s3681_s16, %s2857_s28 }
  0x47   : > { %2545 = vmatprep.mubr.msk.f32.mxu0 %vm233_vm1, %v3342_v62  ;;  %2432 = vmatprep.mubr.msk.f32.mxu1 %vm233_vm1, %v3132_v25  ;;  %v489_v17 = vrot.slane %v207_v57, 1  ;;  %v491_v33 = vrot.slane %v3265_v14, 1  ;;  %v492_v34 = vrot.slane %v3296_v31, 1  ;;  %v494_v49 = vrot.slane %v210_v10, 1  ;;  %p2853_p13 = scmp.ne.s32.totalorder %s3681_s16, %s2852_s21  ;;  %p2860_p4 = scmp.lt.s32.totalorder %s2858_s29, %s2852_s21 }
  0x48   : > { %v3421_v40 = vsel %vm455_vm2, %v486_v63, %v487_v3  ;;  %v693_v55 = vrot.slane %v3073_v4, 2  ;;  %v694_v63 = vrot.slane %v3076_v5, 2  ;;  %v696_v5 = vrot.slane %v3268_v15, 2 }
  0x49   : > { %v3435_v57 = vsel %vm455_vm2, %v487_v3, %v489_v17  ;;  %v3442_v26 = vsel %vm455_vm2, %v491_v33, %v492_v34  ;;  %v3454_v4 = vsel %vm455_vm2, %v492_v34, %v494_v49  ;;  %p2854_p0 = pnand %p2853_p13, %p3022_p3  ;;  %p2861_p5 = por %p2860_p4, %p2859_p2 }
  0x4a   : > { %2546 = vmatmul.mubr.msk.f32.gmra.mrb[10].mxu0 %vm233_vm1, %v3364_v19  ;;  %2433 = vmatmul.mubr.msk.f32.gmra.mrb[4].mxu1 %vm233_vm1, %v3152_v30  ;;  %v697_v10 = vsel %vm692_vm3, %v694_v63, %v696_v5 }
  0x4b   : > { %2548 = vmatprep.mubr.msk.f32.mxu0 %vm233_vm1, %v3367_v20  ;;  %2435 = vmatprep.mubr.msk.f32.mxu1 %vm233_vm1, %v3158_v32  ;;  %p2855_p1 = pneg %p2854_p0 }
  0x4d   : > { %p2862_p6 = pnand %p2861_p5, %p2855_p1 }
  0x4e   : > { %2549 = vmatmul.mubr.msk.f32.gmra.mrb[12].mxu0 %vm233_vm1, %v3383_v24  ;;  %2436 = vmatmul.mubr.msk.f32.gmra.mrb[6].mxu1 %vm233_vm1, %v3175_v36 }
  0x4f   : > { %2551 = vmatprep.mubr.msk.f32.mxu0 %vm233_vm1, %v3387_v41  ;;  %2438 = vmatprep.mubr.msk.f32.mxu1 %vm233_vm1, %v3179_v38 }
  0x52   : > { %2552 = vmatmul.mubr.msk.f32.gmra.mrb[14].mxu0 %vm233_vm1, %v3400_v52  ;;  %2439 = vmatmul.mubr.msk.f32.gmra.mrb[8].mxu1 %vm233_vm1, %v3192_v42 }
  0x53   : > { %2556 = vmatprep.mubr.msk.f32.mxu0 %vm233_vm1, %v3087_v8  ;;  %2441 = vmatprep.mubr.msk.f32.mxu1 %vm233_vm1, %v3403_v61 }
  0x56   : > { %2557 = vmatmul.mubr.msk.f32.vlgmr.msra.gmra.mrb[0].mxu0 %vm233_vm1, %v3100_v13  ;;  %2442 = vmatmul.mubr.msk.f32.gmra.mrb[10].mxu1 %vm233_vm1, %v3416_v45 }
  0x57   : > { %2581 = vmatpush3.msk.msra.mxu0 %vm282_vm0, %v3225_v53  ;;  %2559 = vmatprep.mubr.msk.f32.mxu0 %vm233_vm1, %v3111_v18  ;;  %v695_v53 = vsel %vm692_vm3, %v693_v55, %v694_v63 }
  0x58   : > { %2444 = vmatprep.mubr.msk.f32.mxu1 %vm233_vm1, %v3421_v40  ;;  %2606 = vmatprep.subr.msk.mxu0 %vm282_vm0, %v225_v46 }
  0x5a   : > { %2560 = vmatmul.mubr.msk.f32.gmra.mrb[2].mxu0 %vm233_vm1, %v3118_v21  ;;  %2445 = vmatmul.mubr.msk.f32.gmra.mrb[12].mxu1 %vm233_vm1, %v3435_v57 }
  0x5b   : > { %2562 = vmatprep.mubr.msk.f32.mxu0 %vm233_vm1, %v3136_v27  ;;  %2447 = vmatprep.mubr.msk.f32.mxu1 %vm233_vm1, %v3442_v26 }
  0x5e   : > { %2563 = vmatmul.mubr.msk.f32.gmra.mrb[4].mxu0 %vm233_vm1, %v3139_v28  ;;  %2448 = vmatmul.mubr.msk.f32.gmra.mrb[14].mxu1 %vm233_vm1, %v3454_v4 }
  0x5f   : > { %2565 = vmatprep.mubr.msk.f32.mxu0 %vm233_vm1, %v3198_v44  ;;  %2452 = vmatprep.mubr.msk.f32.mxu1 %vm233_vm1, %v695_v53 }
  0x62   : > { %2566 = vmatmul.mubr.msk.f32.gmra.mrb[6].mxu0 %vm233_vm1, %v3214_v48  ;;  %2453 = vmatmul.mubr.msk.f32.vlgmr.msra.gmra.mrb[0].mxu1 %vm233_vm1, %v697_v10 }
  0x63   : > { %2477 = vmatpush3.msk.msra.mxu1 %vm282_vm0, %v3327_v59  ;;  %2568 = vmatprep.mubr.msk.f32.mxu0 %vm233_vm1, %v3232_v56 }
  0x64   : > { %2455 = vmatprep.mubr.msk.f32.mxu1 %vm233_vm1, %v3195_v43  ;;  %2632 = vmatprep.subr.msk.mxu1 %vm282_vm0, %v3053_v2 }
  0x66   : > { %2569 = vmatmul.mubr.msk.f32.gmra.mrb[8].mxu0 %vm233_vm1, %v3254_v1  ;;  %2456 = vmatmul.mubr.msk.f32.gmra.mrb[2].mxu1 %vm233_vm1, %v3211_v47 }
  0x67   : > { %2571 = vmatprep.mubr.msk.f32.mxu0 %vm233_vm1, %v3265_v14  ;;  %2458 = vmatprep.mubr.msk.f32.mxu1 %vm233_vm1, %v3218_v50 }
  0x6a   : > { %2572 = vmatmul.mubr.msk.f32.gmra.mrb[10].mxu0 %vm233_vm1, %v3296_v31  ;;  %2459 = vmatmul.mubr.msk.f32.gmra.mrb[4].mxu1 %vm233_vm1, %v3251_v0 }
  0x6b   : > { %2574 = vmatprep.mubr.msk.f32.mxu0 %vm233_vm1, %v3350_v9  ;;  %2461 = vmatprep.mubr.msk.f32.mxu1 %vm233_vm1, %v3262_v12 }
  0x6e   : > { %2575 = vmatmul.mubr.msk.f32.gmra.mrb[12].mxu0 %vm233_vm1, %v3353_v11  ;;  %2462 = vmatmul.mubr.msk.f32.gmra.mrb[6].mxu1 %vm233_vm1, %v3293_v29 }
  0x6f   : > { %2577 = vmatprep.mubr.msk.f32.mxu0 %vm233_vm1, %v3228_v54  ;;  %2464 = vmatprep.mubr.msk.f32.mxu1 %vm233_vm1, %v3301_v37 }
  0x72   : > { %2578 = vmatmul.mubr.msk.f32.gmra.mrb[14].mxu0 %vm233_vm1, %v3236_v58  ;;  %2465 = vmatmul.mubr.msk.f32.gmra.mrb[8].mxu1 %vm233_vm1, %v3315_v35 }
  0x73   : > { %2582 = vmatprep.mubr.msk.f32.mxu0 %vm233_vm1, %v3132_v25  ;;  %2467 = vmatprep.mubr.msk.f32.mxu1 %vm233_vm1, %v3319_v51  ;;  %v1100_v25 = vrot.slane %v3350_v9, 1 }
  0x76   : > { %2583 = vmatmul.mubr.msk.f32.vlgmr.msra.gmra.mrb[0].mxu0 %vm233_vm1, %v3152_v30  ;;  %2468 = vmatmul.mubr.msk.f32.gmra.mrb[10].mxu1 %vm233_vm1, %v3337_v60  ;;  %v1101_v30 = vrot.slane %v3353_v11, 1 }
  0x77   : > { %2607 = vmatpush3.msk.msra.mxu0 %vm282_vm0, %v225_v46  ;;  %2585 = vmatprep.mubr.msk.f32.mxu0 %vm233_vm1, %v3158_v32 }
  0x78   : > { %2470 = vmatprep.mubr.msk.f32.mxu1 %vm233_vm1, %v3342_v62 }
  0x7a   : > { %2586 = vmatmul.mubr.msk.f32.gmra.mrb[2].mxu0 %vm233_vm1, %v3175_v36  ;;  %2471 = vmatmul.mubr.msk.f32.gmra.mrb[12].mxu1 %vm233_vm1, %v3364_v19 }
  0x7b   : > { %2588 = vmatprep.mubr.msk.f32.mxu0 %vm233_vm1, %v3179_v38  ;;  %2473 = vmatprep.mubr.msk.f32.mxu1 %vm233_vm1, %v3367_v20 }
  0x7e   : > { %2589 = vmatmul.mubr.msk.f32.gmra.mrb[4].mxu0 %vm233_vm1, %v3192_v42  ;;  %2474 = vmatmul.mubr.msk.f32.gmra.mrb[14].mxu1 %vm233_vm1, %v3383_v24  ;;  %v3637_v42 = vld [vmem:[%s3741_s2] ss:$0 sm:$0xff] }
  0x7f   : > { %2591 = vmatprep.mubr.msk.f32.mxu0 %vm233_vm1, %v3403_v61  ;;  %2478 = vmatprep.mubr.msk.f32.mxu1 %vm233_vm1, %v3079_v6  ;;  %v1102_v6 = vsel %vm455_vm2, %v1100_v25, %v1101_v30 }
  0x82   : > { %2592 = vmatmul.mubr.msk.f32.gmra.mrb[6].mxu0 %vm233_vm1, %v3416_v45  ;;  %2479 = vmatmul.mubr.msk.f32.vlgmr.msra.gmra.mrb[0].mxu1 %vm233_vm1, %v3084_v7 }
  0x83   : > { %2633 = vmatpush3.msk.msra.mxu1 %vm282_vm0, %v3053_v2  ;;  %2594 = vmatprep.mubr.msk.f32.mxu0 %vm233_vm1, %v3421_v40  ;;  %v1103_v2 = vrot.slane %v3372_v39, 1 }
  0x84   : > { %2481 = vmatprep.mubr.msk.f32.mxu1 %vm233_vm1, %v3087_v8  ;;  %v3746_v8 = vld [vmem:[#allocation5_spill] sm:$0xff] }
  0x85   : > { %v1104_v7 = vsel %vm455_vm2, %v1101_v30, %v1103_v2 }
  0x86   : > { %2595 = vmatmul.mubr.msk.f32.gmra.mrb[8].mxu0 %vm233_vm1, %v3435_v57  ;;  %2482 = vmatmul.mubr.msk.f32.gmra.mrb[2].mxu1 %vm233_vm1, %v3100_v13 }
  0x87   : > { %2597 = vmatprep.mubr.msk.f32.mxu0 %vm233_vm1, %v3442_v26  ;;  %2484 = vmatprep.mubr.msk.f32.mxu1 %vm233_vm1, %v3111_v18 }
  0x8a   : > { %2598 = vmatmul.mubr.msk.f32.gmra.mrb[10].mxu0 %vm233_vm1, %v3454_v4  ;;  %2485 = vmatmul.mubr.msk.f32.gmra.mrb[4].mxu1 %vm233_vm1, %v3118_v21 }
  0x8b   : > { %2600 = vmatprep.mubr.msk.f32.mxu0 %vm233_vm1, %v1102_v6  ;;  %2487 = vmatprep.mubr.msk.f32.mxu1 %vm233_vm1, %v3136_v27 }
  0x8e   : > { %2601 = vmatmul.mubr.msk.f32.gmra.mrb[12].mxu0 %vm233_vm1, %v1104_v7  ;;  %2488 = vmatmul.mubr.msk.f32.gmra.mrb[6].mxu1 %vm233_vm1, %v3139_v28 }
  0x8f   : > { %2603 = vmatprep.mubr.msk.f32.mxu0 %vm233_vm1, %v3273_v16  ;;  %2490 = vmatprep.mubr.msk.f32.mxu1 %vm233_vm1, %v3198_v44 }
  0x92   : > { %2604 = vmatmul.mubr.msk.f32.gmra.mrb[14].mxu0 %vm233_vm1, %v3283_v23  ;;  %2491 = vmatmul.mubr.msk.f32.gmra.mrb[8].mxu1 %vm233_vm1, %v3214_v48 }
  0x93   : > { %2608 = vmatprep.mubr.msk.f32.mxu0 %vm233_vm1, %v3218_v50  ;;  %2493 = vmatprep.mubr.msk.f32.mxu1 %vm233_vm1, %v3232_v56 }
  0x96   : > { %2609 = vmatmul.mubr.msk.f32.vlgmr.msra.gmra.mrb[0].mxu0 %vm233_vm1, %v3251_v0  ;;  %2494 = vmatmul.mubr.msk.f32.gmra.mrb[10].mxu1 %vm233_vm1, %v3254_v1 }
  0x97   : > { %2611 = vmatprep.mubr.msk.f32.mxu0 %vm233_vm1, %v3262_v12  ;;  %2496 = vmatprep.mubr.msk.f32.mxu1 %vm233_vm1, %v3265_v14 }
  0x9a   : > { %2612 = vmatmul.mubr.msk.f32.gmra.mrb[2].mxu0 %vm233_vm1, %v3293_v29  ;;  %2497 = vmatmul.mubr.msk.f32.gmra.mrb[12].mxu1 %vm233_vm1, %v3296_v31 }
  0x9b   : > { %2614 = vmatprep.mubr.msk.f32.mxu0 %vm233_vm1, %v3301_v37  ;;  %2499 = vmatprep.mubr.msk.f32.mxu1 %vm233_vm1, %v3350_v9 }
  0x9e   : > { %2615 = vmatmul.mubr.msk.f32.gmra.mrb[4].mxu0 %vm233_vm1, %v3315_v35  ;;  %2500 = vmatmul.mubr.msk.f32.gmra.mrb[14].mxu1 %vm233_vm1, %v3353_v11 }
  0x9f   : > { %2617 = vmatprep.mubr.msk.f32.mxu0 %vm233_vm1, %v3319_v51  ;;  %2516 = vmatprep.mubr.msk.f32.mxu1 %vm233_vm1, %v3403_v61 }
  0xa2   : > { %2618 = vmatmul.mubr.msk.f32.gmra.mrb[6].mxu0 %vm233_vm1, %v3337_v60  ;;  %2517 = vmatmul.mubr.msk.f32.vlgmr.msra.gmra.mrb[8].mxu1 %vm233_vm1, %v3416_v45 }
  0xa3   : > { %2620 = vmatprep.mubr.msk.f32.mxu0 %vm233_vm1, %v3342_v62  ;;  %2519 = vmatprep.mubr.msk.f32.mxu1 %vm233_vm1, %v3421_v40 }
  0xa6   : > { %2621 = vmatmul.mubr.msk.f32.gmra.mrb[8].mxu0 %vm233_vm1, %v3364_v19  ;;  %2520 = vmatmul.mubr.msk.f32.gmra.mrb[10].mxu1 %vm233_vm1, %v3435_v57 }
  0xa7   : > { %2623 = vmatprep.mubr.msk.f32.mxu0 %vm233_vm1, %v3367_v20  ;;  %2522 = vmatprep.mubr.msk.f32.mxu1 %vm233_vm1, %v3442_v26 }
  0xaa   : > { %2624 = vmatmul.mubr.msk.f32.gmra.mrb[10].mxu0 %vm233_vm1, %v3383_v24  ;;  %2523 = vmatmul.mubr.msk.f32.gmra.mrb[12].mxu1 %vm233_vm1, %v3454_v4 }
  0xab   : > { %2626 = vmatprep.mubr.msk.f32.mxu0 %vm233_vm1, %v3387_v41  ;;  %2525 = vmatprep.mubr.msk.f32.mxu1 %vm233_vm1, %v1102_v6 }
  0xae   : > { %2627 = vmatmul.mubr.msk.f32.gmra.mrb[12].mxu0 %vm233_vm1, %v3400_v52  ;;  %2526 = vmatmul.mubr.msk.f32.gmra.mrb[14].mxu1 %vm233_vm1, %v1104_v7 }
  0xaf   : > { %2629 = vmatprep.mubr.msk.f32.mxu0 %vm233_vm1, %v3276_v22 }
  0xb2   : > { %2630 = vmatmul.mubr.msk.f32.gmra.mrb[14].mxu0 %vm233_vm1, %v3746_v8 }
 0x155   : > { %v2480_v13 = vpop.f32.mrb[0].mxu1 }
 0x156   : > { %v1004_v18 = vpop.f32.mrb[1].mxu1  ;;  %v2634_v43 = vadd.f32 %v2480_v13, %v3637_v42 }
 0x157   : > { %v2636_v44 = vadd.f32 %v3637_v42, %v1004_v18 }
 0x159   : > { %v2483_v21 = vpop.f32.mrb[2].mxu1 }
 0x15a   : > { %v1014_v27 = vpop.f32.mrb[3].mxu1  ;;  %v2638_v56 = vadd.f32 %v2483_v21, %v3637_v42 }
 0x15b   : > { %v2640_v58 = vadd.f32 %v3637_v42, %v1014_v27 }
 0x15d   : > { %v2486_v28 = vpop.f32.mrb[4].mxu1 }
 0x15e   : > { %v1024_v32 = vpop.f32.mrb[5].mxu1  ;;  %v2642_v15 = vadd.f32 %v2486_v28, %v3637_v42 }
 0x15f   : > { %v2644_v16 = vadd.f32 %v3637_v42, %v1024_v32 }
 0x161   : > { %v2489_v36 = vpop.f32.mrb[6].mxu1 }
 0x162   : > { %v1034_v38 = vpop.f32.mrb[7].mxu1  ;;  %v2646_v31 = vadd.f32 %v2489_v36, %v3637_v42 }
 0x163   : > { %v2648_v37 = vadd.f32 %v3637_v42, %v1034_v38 }
 0x169   : > { %v2610_v47 = vpop.f32.mrb[0].mxu0 }
 0x16a   : > { %v2635_v48 = vadd.f32 %v2634_v43, %v2610_v47  ;;  %v1868_v50 = vpop.f32.mrb[1].mxu0 }
 0x16b   : > { %v2637_v54 = vadd.f32 %v2636_v44, %v1868_v50 }
 0x16c   : > { %1964 = vst [vmem:[%s3644_s5 + $0x8] sm:$0xff] %v2635_v48 }
 0x16d   : > { %1963 = vst [vmem:[%s3644_s5] sm:$0xff] %v2637_v54  ;;  %v2613_v0 = vpop.f32.mrb[2].mxu0 }
 0x16e   : > { %v2639_v1 = vadd.f32 %v2638_v56, %v2613_v0  ;;  %v1878_v12 = vpop.f32.mrb[3].mxu0 }
 0x16f   : > { %v2641_v14 = vadd.f32 %v2640_v58, %v1878_v12 }
 0x170   : > { %1966 = vst [vmem:[%s3644_s5 + $0x18] sm:$0xff] %v2639_v1 }
 0x171   : > { %1965 = vst [vmem:[%s3644_s5 + $0x10] sm:$0xff] %v2641_v14  ;;  %v2616_v22 = vpop.f32.mrb[4].mxu0 }
 0x172   : > { %v2643_v23 = vadd.f32 %v2642_v15, %v2616_v22  ;;  %v1888_v26 = vpop.f32.mrb[5].mxu0 }
 0x173   : > { %v2645_v29 = vadd.f32 %v2644_v16, %v1888_v26 }
 0x174   : > { %1968 = vst [vmem:[%s3644_s5 + $0x28] sm:$0xff] %v2643_v23 }
 0x175   : > { %1967 = vst [vmem:[%s3644_s5 + $0x20] sm:$0xff] %v2645_v29  ;;  %v2619_v35 = vpop.f32.mrb[6].mxu0  ;;  %v2518_v51 = vpop.f32.mrb[8].mxu1 }
 0x176   : > { %v2647_v59 = vadd.f32 %v2646_v31, %v2619_v35  ;;  %v2650_v60 = vadd.f32 %v2518_v51, %v3637_v42  ;;  %v1898_v62 = vpop.f32.mrb[7].mxu0  ;;  %v1218_v9 = vpop.f32.mrb[9].mxu1 }
 0x177   : > { %v2649_v11 = vadd.f32 %v2648_v37, %v1898_v62  ;;  %v2652_v19 = vadd.f32 %v3637_v42, %v1218_v9 }
 0x178   : > { %1970 = vst [vmem:[%s3644_s5 + $0x38] sm:$0xff] %v2647_v59 }
 0x179   : > { %1969 = vst [vmem:[%s3644_s5 + $0x30] sm:$0xff] %v2649_v11  ;;  %v2622_v20 = vpop.f32.mrb[8].mxu0  ;;  %v2521_v39 = vpop.f32.mrb[10].mxu1 }
 0x17a   : > { %v2651_v24 = vadd.f32 %v2650_v60, %v2622_v20  ;;  %v2654_v41 = vadd.f32 %v2521_v39, %v3637_v42  ;;  %v1908_v52 = vpop.f32.mrb[9].mxu0  ;;  %v1228_v61 = vpop.f32.mrb[11].mxu1 }
 0x17b   : > { %v2653_v3 = vadd.f32 %v2652_v19, %v1908_v52  ;;  %v2656_v45 = vadd.f32 %v3637_v42, %v1228_v61 }
 0x17c   : > { %1972 = vst [vmem:[%s3644_s5 + $0x48] sm:$0xff] %v2651_v24 }
 0x17d   : > { %1971 = vst [vmem:[%s3644_s5 + $0x40] sm:$0xff] %v2653_v3  ;;  %v2625_v17 = vpop.f32.mrb[10].mxu0  ;;  %v2524_v33 = vpop.f32.mrb[12].mxu1 }
 0x17e   : > { %v2655_v34 = vadd.f32 %v2654_v41, %v2625_v17  ;;  %v2658_v40 = vadd.f32 %v2524_v33, %v3637_v42  ;;  %v1918_v46 = vpop.f32.mrb[11].mxu0  ;;  %v1238_v57 = vpop.f32.mrb[13].mxu1 }
 0x17f   : > { %v2657_v49 = vadd.f32 %v2656_v45, %v1918_v46  ;;  %v2660_v55 = vadd.f32 %v3637_v42, %v1238_v57 }
 0x180   : > { %1974 = vst [vmem:[%s3644_s5 + $0x58] sm:$0xff] %v2655_v34 }
 0x181   : > { %1973 = vst [vmem:[%s3644_s5 + $0x50] sm:$0xff] %v2657_v49  ;;  %v2628_v63 = vpop.f32.mrb[12].mxu0  ;;  %v2527_v4 = vpop.f32.mrb[14].mxu1 }
 0x182   : > { %v2659_v5 = vadd.f32 %v2658_v40, %v2628_v63  ;;  %v2662_v53 = vadd.f32 %v2527_v4, %v3637_v42  ;;  %v1928_v10 = vpop.f32.mrb[13].mxu0  ;;  %v1248_v25 = vpop.f32.mrb[15].mxu1 }
 0x183   : > { %v2661_v30 = vadd.f32 %v2660_v55, %v1928_v10  ;;  %v2664_v2 = vadd.f32 %v3637_v42, %v1248_v25 }
 0x184   : > { %1976 = vst [vmem:[%s3644_s5 + $0x68] sm:$0xff] %v2659_v5 }
 0x185   : > { %1975 = vst [vmem:[%s3644_s5 + $0x60] sm:$0xff] %v2661_v30  ;;  %v2631_v6 = vpop.f32.mrb[14].mxu0 }
 0x186   : > { %v2663_v7 = vadd.f32 %v2662_v53, %v2631_v6  ;;  %v1938_v8 = vpop.f32.mrb[15].mxu0 }
 0x187   : > { %v2665_v13 = vadd.f32 %v2664_v2, %v1938_v8 }
 0x188   : > { %1978 = vst [vmem:[%s3644_s5 + $0x78] sm:$0xff] %v2663_v7 }
 0x189   : > { %1977 = vst [vmem:[%s3644_s5 + $0x70] sm:$0xff] %v2665_v13 }
 0x18a   : > { %2865 = shalt.err (!%p2862_p6)
}
 0x18b   : > { %s2866_s27 = scalar_lea.hbm %s3679_s11, 2048  ;;  %s2870_s6 = scalar_lea.hbm %s3742_s3, 8192 }
 0x18c   : > { %p2867_p7 = scmp.ne.s32.totalorder %s3679_s11, %s2866_s27  ;;  %p2871_p11 = scmp.lt.u32.totalorder %s3679_s11, %s3742_s3 }
 0x18d   : > { %p2872_p12 = scmp.lt.u32.totalorder %s2870_s6, %s2866_s27  ;;  %p2874_p0 = scmp.lt.u32.totalorder %s2866_s27, %s3679_s11 }
 0x18e   : > { %p2868_p9 = pnand %p2867_p7, %p3022_p3 }
 0x18f   : > { %p2873_p13 = por %p2872_p12, %p2871_p11 }
 0x190   : > { %p2869_p10 = pneg %p2868_p9 }
 0x191   : > { %p2875_p1 = por %p2874_p0, %p2873_p13 }
 0x193   : > { %p2876_p2 = pnand %p2875_p1, %p2869_p10 }
 0x195   : > { %2879 = shalt.err (!%p2876_p2)
}
 0x196   : > { %s2949_s15 = smov 128   ;;  %s2950_s9 = smov 8  }
 0x197   : > { %2779 = dma.vmem_to_hbm [thread:$0]  (%p3022_p3), %s3681_s16, 2048, %s3679_s11, %s3687_s20, %s2949_s15, %s2949_s15, %s2950_s9  }
 0x198 PF: > { %p2785_p4 = scmp.ge.s32.totalorder %s2946_s19, 2  ;;  %s2011_s10 = sand.u32 1, %s2918_s12  }
 0x199   : > { %s2012_s21 = scalar_lea.sflag [#allocation3], %s2011_s10 }
 0x19a   : > { %p2782_p5 = pnand %p2785_p4, %p3031_p8 }
 0x19c   : > { %2913 = dma.done.wait (!%p2782_p5), %s2012_s21, 2048  }
 0x19d   : > { %2915 = vsyncadd (!%p2782_p5), %s2012_s21, 4294965248  ;;  %s16_s19 = sadd.s32 1, %s2946_s19   ;;  %s3747_s12 = smov %s2922_s13 }
 0x19e   : > { %p13_p6 = scmp.ge.s32.totalorder %s16_s19, 6   ;;  %s3748_s13 = smov %s2926_s14 }
 0x19f   : > { %s3749_s14 = smov %s3040_s30  ;;  %s3750_s15 = smov %s2938_s17 }
 0x1a0   : > { %s3751_s16 = smov %s2942_s18  ;;  %s3752_s17 = smov %s3755_s22 }
 0x1a1   : > { %s3753_s18 = smov %s3759_s23  ;;  %15 = sbr.rel (!%p13_p6) target bundleno = 5 (0x5), region = 68 }
 0x1a8   :  { %2017 = vsyncpa [#allocation3], 1 }
 0x1a9   :  { %2019 = vsyncpa [#allocation3 + $0x1], 1 }

</bundles_post_ra>
